<compile_context>
chip_gen: v6e
topology: v6e:2x2x1
jax: 0.10.0
libtpu: 0.0.40
codegen_flags: <defaults>
</compile_context>

<pallas_src>
import functools

import jax
import jax.numpy as jnp
from jax.experimental import pallas as pl
from jax.experimental.pallas import tpu as pltpu

HIDDEN = 128    # hidden width of the fc layer (fixed by the PyTorch module)
LANE = 128      # TPU lane width
SUBLANE = 8     # TPU sublane width


def _round_up(x, m):
    return (x + m - 1) // m * m


def dqn_kernel(x_ref, fcw_ref, fcb_ref, hw_ref, hb_ref, q_ref, *, num_actions):
    # x: [TB, S] f32 (unpadded feature dim). Cast to bf16 only for the MXU.
    x = x_ref[...].astype(fcw_ref.dtype)

    # fc: Linear(S -> 128) + ReLU. bf16 MXU operands, f32 accumulate/elementwise.
    h = jnp.dot(x, fcw_ref[...], preferred_element_type=jnp.float32)
    h = jnp.maximum(h + fcb_ref[...], 0.0)                          # [TB, 128] f32

    # Fused head: columns [0, A) = advantage, column A = value, rest zero-padded
    # (weights AND bias padded with exact zeros, so padded output cols are 0).
    head = jnp.dot(h.astype(hw_ref.dtype), hw_ref[...],
                   preferred_element_type=jnp.float32) + hb_ref[...]  # [TB, N_pad]

    val = head[:, num_actions:num_actions + 1]                      # [TB, 1]
    # Padded columns are exactly zero, so row_sum = sum(adv) + val.
    row_sum = jnp.sum(head, axis=1, keepdims=True)
    adv_mean = (row_sum - val) * (1.0 / num_actions)

    # q = val + (adv - adv_mean); columns >= A hold garbage and are sliced off in
    # the wrapper (keeps the store lane-dense, unmasked).
    q_ref[...] = (head + (val - adv_mean)).astype(q_ref.dtype)


def prepare_params(params):
    """One-time (per parameter update) weight prep, kept OUT of the per-call path.

    Fuses the advantage/value heads into one lane-dense [128, 128] weight (zero
    padded), keeps biases in f32, casts matmul weights to bf16."""
    fc_w, fc_b, adv_w, adv_b, val_w, val_b = params
    H = fc_w.shape[1]
    A = adv_w.shape[1]
    n_pad = _round_up(max(A + 1, LANE), LANE)

    fcw = fc_w.astype(jnp.bfloat16)                                  # [S, H]
    fcb = fc_b.astype(jnp.float32).reshape(1, H)                     # [1, H]
    headw = (jnp.zeros((H, n_pad), jnp.bfloat16)
             .at[:, :A].set(adv_w.astype(jnp.bfloat16))
             .at[:, A:A + 1].set(val_w.astype(jnp.bfloat16)))        # [H, n_pad]
    headb = (jnp.zeros((1, n_pad), jnp.float32)
             .at[:, :A].set(adv_b.reshape(1, A))
             .at[:, A:A + 1].set(val_b.reshape(1, 1)))               # [1, n_pad]
    return fcw, fcb, headw, headb


def dqn_forward(state, fcw, fcb, headw, headb, *, num_actions,
                tile_b=1024, interpret=False):
    """state: [B, S] float32 -> qvalue: [B, A] float32."""
    B, S = state.shape
    H = fcw.shape[1]
    n_pad = headw.shape[1]
    A = num_actions

    # --- batch tiling -------------------------------------------------------
    # Ensure >= 2 grid steps when the batch allows it (v7x has 2 TensorCores and
    # shards "parallel" grid axes across them; extra steps are harmless on
    # v5e/v6e). Tiles are sublane (8) aligned; cap at tile_b for VMEM/pipelining.
    b8 = _round_up(B, SUBLANE)
    if b8 >= 2 * SUBLANE:
        half = _round_up((b8 + 1) // 2, SUBLANE)
        tb = min(tile_b, half)
    else:
        tb = b8
    b_pad = _round_up(B, tb)
    grid = (b_pad // tb,)

    # Only batch-dim padding when the tile does not divide B (no feature padding,
    # no dtype-cast pass over the batch in the wrapper).
    if b_pad != B:
        x = jnp.zeros((b_pad, S), state.dtype).at[:B, :].set(state)
    else:
        x = state

    flops = 2 * b_pad * H * (S + n_pad)
    bytes_accessed = int(b_pad * S * 4            # state read (f32, unpadded S)
                         + S * H * 2              # fc weight (bf16)
                         + H * 4                  # fc bias (f32)
                         + H * n_pad * 2          # fused head weight (bf16)
                         + n_pad * 4              # fused head bias (f32)
                         + b_pad * n_pad * 2)     # output slab write (bf16)

    kernel = functools.partial(dqn_kernel, num_actions=A)

    q_pad = pl.pallas_call(
        kernel,
        out_shape=jax.ShapeDtypeStruct((b_pad, n_pad), jnp.bfloat16),
        grid=grid,
        in_specs=[
            pl.BlockSpec((tb, S), lambda i: (i, 0)),       # state tile (pipelined)
            pl.BlockSpec((S, H), lambda i: (0, 0)),        # fc weight (resident)
            pl.BlockSpec((1, H), lambda i: (0, 0)),        # fc bias (f32)
            pl.BlockSpec((H, n_pad), lambda i: (0, 0)),    # fused head weight
            pl.BlockSpec((1, n_pad), lambda i: (0, 0)),    # fused head bias (f32)
        ],
        out_specs=pl.BlockSpec((tb, n_pad), lambda i: (i, 0)),
        compiler_params=pltpu.CompilerParams(
            dimension_semantics=("parallel",)),
        cost_estimate=pl.CostEstimate(
            flops=flops, transcendentals=0, bytes_accessed=bytes_accessed),
        interpret=interpret,
    )(x, fcw, fcb, headw, headb)

    return q_pad[:B, :A].astype(jnp.float32)


def init_params(key, no_states, no_actions, hidden=HIDDEN):
    """Deterministic PyTorch-style Linear init (uniform +/- 1/sqrt(fan_in)).

    Weights are stored as [in, out] (transpose of torch's [out, in])."""
    def linear(k, fan_in, fan_out):
        kw, kb = jax.random.split(k)
        bound = 1.0 / jnp.sqrt(fan_in)
        w = jax.random.uniform(kw, (fan_in, fan_out), jnp.float32, -bound, bound)
        b = jax.random.uniform(kb, (1, fan_out), jnp.float32, -bound, bound)
        return w, b

    k1, k2, k3 = jax.random.split(key, 3)
    fc_w, fc_b = linear(k1, no_states, hidden)
    adv_w, adv_b = linear(k2, hidden, no_actions)
    val_w, val_b = linear(k3, hidden, 1)
    return fc_w, fc_b, adv_w, adv_b, val_w, val_b


def dqn_reference(state, params):
    """Pure-JAX f32 reference matching the PyTorch forward."""
    fc_w, fc_b, adv_w, adv_b, val_w, val_b = params
    h = jnp.maximum(state @ fc_w + fc_b, 0.0)
    adv = h @ adv_w + adv_b
    val = h @ val_w + val_b
    return val + (adv - adv.mean(axis=1, keepdims=True))


if __name__ == "__main__":
    no_states = 16     # small observation vector
    no_actions = 8
    batch = 8

    key = jax.random.PRNGKey(0)
    k_params, k_state, k_state2 = jax.random.split(key, 3)

    params = init_params(k_params, no_states, no_actions)
    state = jax.random.normal(k_state, (batch, no_states), jnp.float32)

    # One-time weight prep (per parameter update), out of the per-call path.
    prepped = jax.block_until_ready(prepare_params(params))

    fwd = jax.jit(functools.partial(dqn_forward, num_actions=no_actions))

    q = jax.block_until_ready(fwd(state, *prepped))
    q_ref = dqn_reference(state, params)
    assert q.shape == (batch, no_actions)
    # bf16 MXU operands with f32 accumulation -> relaxed tolerance vs f32 ref.
    assert jnp.allclose(q, q_ref, atol=5e-2, rtol=5e-2), "mismatch vs JAX reference"

    # Second shape: non-multiple-of-tile batch exercises padding + a 2-step grid.
    batch2 = 40
    state2 = jax.random.normal(k_state2, (batch2, no_states), jnp.float32)
    q2 = jax.block_until_ready(fwd(state2, *prepped))
    q2_ref = dqn_reference(state2, params)
    assert q2.shape == (batch2, no_actions)
    assert jnp.allclose(q2, q2_ref, atol=5e-2, rtol=5e-2), "mismatch vs JAX reference"

    print("KERNEL_OK")
</pallas_src>

<mosaic_0001>
module attributes {stable_mosaic.version = 11 : i64} {
  func.func @dqn_kernel(%arg0: i32, %arg1: memref<8x16xf32, #tpu.memory_space<vmem>>, %arg2: memref<16x128xbf16, #tpu.memory_space<vmem>>, %arg3: memref<1x128xf32, #tpu.memory_space<vmem>>, %arg4: memref<128x128xbf16, #tpu.memory_space<vmem>>, %arg5: memref<1x128xf32, #tpu.memory_space<vmem>>, %arg6: memref<8x128xbf16, #tpu.memory_space<vmem>>) attributes {dimension_semantics = [#tpu.dimension_semantics<parallel>], iteration_bounds = array<i64: 1>, scalar_prefetch = 0 : i64, scratch_operands = 0 : i64, tpu.core_type = #tpu.core_type<tc>, window_params = [{transform_indices = @transform_0, window_bounds = array<i64: 8, 16>}, {pipeline_mode = #tpu.pipeline_mode<synchronous>, transform_indices = @transform_1, window_bounds = array<i64: 16, 128>}, {pipeline_mode = #tpu.pipeline_mode<synchronous>, transform_indices = @transform_2, window_bounds = array<i64: 1, 128>}, {pipeline_mode = #tpu.pipeline_mode<synchronous>, transform_indices = @transform_3, window_bounds = array<i64: 128, 128>}, {pipeline_mode = #tpu.pipeline_mode<synchronous>, transform_indices = @transform_4, window_bounds = array<i64: 1, 128>}, {transform_indices = @transform_5, window_bounds = array<i64: 8, 128>}]} {
    %c0 = arith.constant 0 : index
    %c0_0 = arith.constant 0 : index
    %0 = vector.load %arg1[%c0, %c0_0] : memref<8x16xf32, #tpu.memory_space<vmem>>, vector<8x16xf32>
    %1 = arith.truncf %0 : vector<8x16xf32> to vector<8x16xbf16>
    %c0_1 = arith.constant 0 : index
    %c0_2 = arith.constant 0 : index
    %2 = vector.load %arg2[%c0_1, %c0_2] : memref<16x128xbf16, #tpu.memory_space<vmem>>, vector<16x128xbf16>
    %cst = arith.constant dense<0.000000e+00> : vector<8x128xf32>
    %3 = tpu.matmul %1, %2, %cst {dimension_numbers = #tpu.dot_dimension_numbers<[1], [0], [0], [1], [0, 0, 1, 1], [], []>} : vector<8x16xbf16>, vector<16x128xbf16>, vector<8x128xf32> -> vector<8x128xf32>
    %c0_3 = arith.constant 0 : index
    %c0_4 = arith.constant 0 : index
    %4 = vector.load %arg3[%c0_3, %c0_4] : memref<1x128xf32, #tpu.memory_space<vmem>>, vector<1x128xf32>
    %5 = vector.broadcast %4 : vector<1x128xf32> to vector<8x128xf32>
    %6 = arith.addf %3, %5 : vector<8x128xf32>
    %cst_5 = arith.constant 0.000000e+00 : f32
    %7 = vector.broadcast %cst_5 : f32 to vector<8x128xf32>
    %8 = arith.maximumf %6, %7 : vector<8x128xf32>
    %9 = arith.truncf %8 : vector<8x128xf32> to vector<8x128xbf16>
    %c0_6 = arith.constant 0 : index
    %c0_7 = arith.constant 0 : index
    %10 = vector.load %arg4[%c0_6, %c0_7] : memref<128x128xbf16, #tpu.memory_space<vmem>>, vector<128x128xbf16>
    %cst_8 = arith.constant dense<0.000000e+00> : vector<8x128xf32>
    %11 = tpu.matmul %9, %10, %cst_8 {dimension_numbers = #tpu.dot_dimension_numbers<[1], [0], [0], [1], [0, 0, 1, 1], [], []>} : vector<8x128xbf16>, vector<128x128xbf16>, vector<8x128xf32> -> vector<8x128xf32>
    %c0_9 = arith.constant 0 : index
    %c0_10 = arith.constant 0 : index
    %12 = vector.load %arg5[%c0_9, %c0_10] : memref<1x128xf32, #tpu.memory_space<vmem>>, vector<1x128xf32>
    %13 = vector.broadcast %12 : vector<1x128xf32> to vector<8x128xf32>
    %14 = arith.addf %11, %13 : vector<8x128xf32>
    %15 = vector.extract_strided_slice %14 {offsets = [0, 8], sizes = [8, 1], strides = [1, 1]} : vector<8x128xf32> to vector<8x1xf32>
    %cst_11 = arith.constant dense<0.000000e+00> : vector<8xf32>
    %16 = vector.multi_reduction <add>, %14, %cst_11 [1] : vector<8x128xf32> to vector<8xf32>
    %17 = vector.shape_cast %16 : vector<8xf32> to vector<8x1xf32>
    %18 = arith.subf %17, %15 : vector<8x1xf32>
    %cst_12 = arith.constant 1.250000e-01 : f32
    %19 = vector.broadcast %cst_12 : f32 to vector<8x1xf32>
    %20 = arith.mulf %18, %19 : vector<8x1xf32>
    %21 = arith.subf %15, %20 : vector<8x1xf32>
    %22 = vector.broadcast %21 : vector<8x1xf32> to vector<8x128xf32>
    %23 = arith.addf %14, %22 : vector<8x128xf32>
    %24 = arith.truncf %23 : vector<8x128xf32> to vector<8x128xbf16>
    %c0_13 = arith.constant 0 : index
    %c0_14 = arith.constant 0 : index
    %25 = vector.load %arg6[%c0_13, %c0_14] : memref<8x128xbf16, #tpu.memory_space<vmem>>, vector<8x128xbf16>
    tpu.vector_store %arg6[%c0_13, %c0_14], %24 {strides = array<i32>} : memref<8x128xbf16, #tpu.memory_space<vmem>>, vector<8x128xbf16>,
    return
  }
  func.func @transform_0(%arg0: i32) -> (i32, i32) {
    %c0_i32 = arith.constant 0 : i32
    %c0_i32_0 = arith.constant 0 : i32
    return %arg0, %c0_i32 : i32, i32
  }
  func.func @transform_1(%arg0: i32) -> (i32, i32) {
    %c0_i32 = arith.constant 0 : i32
    %c0_i32_0 = arith.constant 0 : i32
    %c0_i32_1 = arith.constant 0 : i32
    return %c0_i32, %c0_i32_0 : i32, i32
  }
  func.func @transform_2(%arg0: i32) -> (i32, i32) {
    %c0_i32 = arith.constant 0 : i32
    %c0_i32_0 = arith.constant 0 : i32
    %c0_i32_1 = arith.constant 0 : i32
    return %c0_i32, %c0_i32_0 : i32, i32
  }
  func.func @transform_3(%arg0: i32) -> (i32, i32) {
    %c0_i32 = arith.constant 0 : i32
    %c0_i32_0 = arith.constant 0 : i32
    %c0_i32_1 = arith.constant 0 : i32
    return %c0_i32, %c0_i32_0 : i32, i32
  }
  func.func @transform_4(%arg0: i32) -> (i32, i32) {
    %c0_i32 = arith.constant 0 : i32
    %c0_i32_0 = arith.constant 0 : i32
    %c0_i32_1 = arith.constant 0 : i32
    return %c0_i32, %c0_i32_0 : i32, i32
  }
  func.func @transform_5(%arg0: i32) -> (i32, i32) {
    %c0_i32 = arith.constant 0 : i32
    %c0_i32_0 = arith.constant 0 : i32
    return %arg0, %c0_i32 : i32, i32
  }
}

</mosaic_0001>

<bundles_post_ra>
// kernel: dqn_forward.1
= control target key start
LH: loop header
LB: loop body
LE: loop exit
PB: predicated region body
PF: predicated region fallthrough
CT: control target
= control target key end

     0   :  { %10 = vsyncpa [#allocation3], 0  ;;  %s440_s0 = inlined_call_operand.hbm [shape: f32[8,16], index: 0, kind: input, shape index: {}]   ;;  %s441_s1 = inlined_call_operand.hbm [shape: bf16[16,128], index: 1, kind: input, shape index: {}]   ;;  %s442_s2 = inlined_call_operand.vmem [shape: f32[1,128], index: 2, kind: input, shape index: {}]   ;;  %s443_s3 = inlined_call_operand.hbm [shape: bf16[128,128], index: 3, kind: input, shape index: {}]   ;;  %s444_s4 = inlined_call_operand.vmem [shape: f32[1,128], index: 4, kind: input, shape index: {}]   ;;  %s445_s5 = inlined_call_operand.vmem [shape: bf16[8,128], index: 5, kind: output, shape index: {}]  }
   0x1   :  { %11 = vsyncpa [#allocation5], 0  ;;  %s384_s18 = smov [#allocation4]  }
   0x2   :  { %s27_s19 = sshll.u32 %s384_s18, 4  ;;  %s28_s19 = int_to_ptr.vmem [resolvable:$true] %s27_s19 }
   0x3   :  { %s328_s20 = scalar_lea.vmem %s28_s19, 128  ;;  %p333_p1 = scmp.lt.s32.totalorder %s28_s19, %s28_s19 }
   0x4   :  { %p329_p0 = scmp.ne.s32.totalorder %s28_s19, %s328_s20  ;;  %p334_p2 = scmp.lt.s32.totalorder %s328_s20, %s328_s20 }
   0x6   :  { %p335_p3 = por %p334_p2, %p333_p1 }
   0x8   :  { %p336_p4 = pnand %p335_p3, %p329_p0 }
   0xa   :  { %339 = shalt.err (!%p336_p4)
}
   0xb   :  { %s385_s21 = smov 64   ;;  %s386_s22 = smov 4  }
   0xc   :  { %33 = dma.hbm_to_vmem [thread:$0]  %s441_s1, 128, %s28_s19, [#allocation5], %s385_s21, %s385_s21, %s386_s22  }
   0xd   :  { %s387_s25 = smov [#allocation2]   ;;  %s388_s27 = smov [#allocation6]  }
   0xe   :  { %s18_s26 = sshll.u32 %s387_s25, 4  ;;  %s41_s28 = sshll.u32 %s388_s27, 4  ;;  %s19_s26 = int_to_ptr.vmem [resolvable:$true] %s18_s26  ;;  %s42_s28 = int_to_ptr.vmem [resolvable:$true] %s41_s28 }
   0xf   :  { %s348_s29 = scalar_lea.vmem %s19_s26, 128  ;;  %p353_p6 = scmp.lt.s32.totalorder %s19_s26, %s19_s26 }
  0x10   :  { %p349_p5 = scmp.ne.s32.totalorder %s19_s26, %s348_s29  ;;  %p354_p7 = scmp.lt.s32.totalorder %s348_s29, %s348_s29 }
  0x12   :  { %p355_p8 = por %p354_p7, %p353_p6 }
  0x14   :  { %p356_p9 = pnand %p355_p8, %p349_p5 }
  0x16   :  { %359 = shalt.err (!%p356_p9)
}
  0x17   :  { %21 = dma.hbm_to_vmem [thread:$0]  %s440_s0, 128, %s19_s26, [#allocation3]  }
  0x18   :  { %s368_s7 = scalar_lea.vmem %s42_s28, 1024  ;;  %p373_p11 = scmp.lt.s32.totalorder %s42_s28, %s42_s28 }
  0x19   :  { %p369_p10 = scmp.ne.s32.totalorder %s42_s28, %s368_s7  ;;  %p374_p12 = scmp.lt.s32.totalorder %s368_s7, %s368_s7 }
  0x1b   :  { %p375_p13 = por %p374_p12, %p373_p11 }
  0x1d   :  { %p376_p0 = pnand %p375_p13, %p369_p10 }
  0x1f   :  { %379 = shalt.err (!%p376_p0)
}
  0x20   :  { %47 = dma.hbm_to_vmem [thread:$0]  %s443_s3, 1024, %s42_s28, [#allocation5], %s385_s21, %s385_s21, %s386_s22  }
  0x21   :  { %380 = dma.done.wait [#allocation3], 128  }
  0x22   :  { %381 = vsyncadd [#allocation3], 4294967168 }
  0x23   :  { %382 = dma.done.wait [#allocation5], 1152  }
  0x24   :  { %383 = vsyncadd [#allocation5], 4294966144  ;;  %v389_v0 = vmov 0.0   ;;  %vm390_vm0 = vmmov 0   ;;  %v311_v1 = vld [vmem:[#allocation4] sm:$0xff]   ;;  %v60_v2 = vld [vmem:[#allocation2] sm:$0xff] }
  0x25   :  { %276 = vmatprep.subr.bf16.mxu0 %v389_v0  ;;  %278 = vmatprep.mubr.msk.bf16.mxu0 %vm390_vm0, %v389_v0  ;;  %v61_v3 = vpack.c.bf16 %v60_v2, %v60_v2  ;;  %vm77_vm1 = vcmask 130048   ;;  %v312_v4 = vld [vmem:[#allocation6 + $0x38] sm:$0xff]   ;;  %v313_v5 = vld [vmem:[#allocation6 + $0x30] sm:$0xff]   ;;  %v314_v6 = vld [vmem:[#allocation6 + $0x28] sm:$0xff]   ;;  %v391_v26 = vmov 8  }
  0x26   :  { %282 = vmatprep.subr.bf16.mxu1 %v389_v0  ;;  %298 = vmatprep.mubr.msk.bf16.mxu1 %vm390_vm0, %v389_v0  ;;  %v315_v7 = vld [vmem:[#allocation6 + $0x20] sm:$0xff]   ;;  %v316_v8 = vld [vmem:[#allocation6 + $0x18] sm:$0xff]   ;;  %v317_v9 = vld [vmem:[#allocation6 + $0x10] sm:$0xff]  }
  0x27   :  { %277 = vmatpush3.bf16.msra.mxu0 %v311_v1  ;;  %283 = vmatpush3.bf16.msra.mxu1 %v312_v4  ;;  %v318_v10 = vld [vmem:[#allocation6 + $0x8] sm:$0xff]   ;;  %v319_v11 = vld [vmem:[#allocation6] sm:$0xff]   ;;  %v253_v12 = vld [vmem:[%s442_s2] ss:$0 sm:$0xff] }
  0x28   :  { %284 = vmatprep.subr.bf16.mxu1 %v389_v0  ;;  %v256_v20 = vld [vmem:[%s444_s4] ss:$0 sm:$0xff]  ;;  %310 = vset.pattern.permute.xlu0 %v391_v26 }
  0x2a   :  { %279 = vmatmul.mubr.msk.bf16.vlgmr.msra.gmra.mxu0 %vm77_vm1, %v61_v3 }
  0x2b   :  { %285 = vmatpush3.bf16.msra.mxu1 %v313_v5 }
  0x2c   :  { %286 = vmatprep.subr.bf16.mxu1 %v389_v0 }
  0x2f   :  { %287 = vmatpush3.bf16.msra.mxu1 %v314_v6 }
  0x30   :  { %288 = vmatprep.subr.bf16.mxu1 %v389_v0 }
  0x33   :  { %289 = vmatpush3.bf16.msra.mxu1 %v315_v7 }
  0x34   :  { %290 = vmatprep.subr.bf16.mxu1 %v389_v0 }
  0x37   :  { %291 = vmatpush3.bf16.msra.mxu1 %v316_v8 }
  0x38   :  { %292 = vmatprep.subr.bf16.mxu1 %v389_v0 }
  0x3b   :  { %293 = vmatpush3.bf16.msra.mxu1 %v317_v9 }
  0x3c   :  { %294 = vmatprep.subr.bf16.mxu1 %v389_v0 }
  0x3f   :  { %295 = vmatpush3.bf16.msra.mxu1 %v318_v10 }
  0x40   :  { %296 = vmatprep.subr.bf16.mxu1 %v389_v0 }
  0x43   :  { %297 = vmatpush3.bf16.msra.mxu1 %v319_v11 }
  0xea   :  { %v115_v13 = vpop.f32.mrf.mxu0 }
  0xeb   :  { %v116_v14 = vadd.f32 %v253_v12, %v115_v13 }
  0xec   :  { %v280_v15 = vpop.f32.mrf.mxu0 }
  0xed   :  { %v121_v16 = vmax.f32 %v116_v14, 0.0 }
  0xee   :  { %v118_v17 = vpop.f32.mrf.mxu0 }
  0xef   :  { %v122_v18 = vpack.c.bf16 %v121_v16, %v121_v16 }
  0xf0   :  { %v281_v19 = vpop.f32.mrf.mxu0 }
  0xf1   :  { %299 = vmatmul.mubr.bf16.vlgmr.msra.gmra.mxu1 %v122_v18 }
 0x1b1   :  { %v228_v21 = vpop.f32.mrf.mxu1 }
 0x1b2   :  { %v229_v22 = vadd.f32 %v256_v20, %v228_v21 }
 0x1b3   :  { %v300_v23 = vpop.f32.mrf.mxu1 }
 0x1b4   :  { %234 = vadd.xlane.f32.xlu0 %v229_v22 }
 0x1b5   :  { %v231_v24 = vpop.f32.mrf.mxu1 }
 0x1b7   :  { %v301_v25 = vpop.f32.mrf.mxu1 }
 0x23d   :  { %v235_v27 = vpop.xlane.xlu0 %234 }
 0x23e   :  { %v236_v28 = vsub.f32 %v235_v27, %v229_v22 }
 0x240   :  { %v237_v29 = vmul.f32 0.125, %v236_v28 }
 0x242   :  { %v238_v30 = vsub.f32 %v229_v22, %v237_v29 }
 0x244   :  { %241 = vperm.xlu0 %310, %v238_v30  }
 0x2bf   :  { %v242_v31 = vpop.permute.xlu0 %241 }
 0x2c0   :  { %v244_v32 = vadd.f32 %v242_v31, %v229_v22 }
 0x2c2   :  { %v245_v33 = vpack.c.bf16 %v244_v32, %v244_v32 }
 0x2c4   :  { %246 = vst [vmem:[%s445_s5] sm:$0xf] %v245_v33 }
 0x2c5   :  { %251 = vsyncpa [#allocation3], 1 }
 0x2c6   :  { %252 = vsyncpa [#allocation5], 1 }

</bundles_post_ra>
